<compile_context>
chip_gen: v7x
topology: tpu7x:2x2x1
jax: 0.10.0
libtpu: 0.0.40
codegen_flags: <defaults>
</compile_context>

<pallas_src>
import functools
import numpy as np
import jax
import jax.numpy as jnp
from jax.experimental import pallas as pl
from jax.experimental.pallas import tpu as pltpu


# ----------------------------------------------------------------------------
# Kernel: elementwise  x * (1/255) - 0.5  on one VMEM tile (lane-dense slab).
# ----------------------------------------------------------------------------
_INV_255 = np.float32(1.0 / 255.0)


def _pixel_preprocess_kernel(x_ref, o_ref):
    o_ref[...] = x_ref[...].astype(jnp.float32) * _INV_255 - np.float32(0.5)


def _sublane_granularity(dtype) -> int:
    """Minimum row multiple for a tiled BlockSpec given the input dtype."""
    itemsize = jnp.dtype(dtype).itemsize
    if itemsize >= 4:
        return 8
    if itemsize == 2:
        return 16
    return 32  # 8-bit types pack (32, 128) per vreg


# ----------------------------------------------------------------------------
# Wrapper: flatten to a lane-dense (rows, lanes) slab, tile rows if large.
# ----------------------------------------------------------------------------
def pixel_preprocess(x, *, block_elems=1 << 20, small_fallback_bytes=64 << 10):
    """Normalizes pixel observations to [-0.5, 0.5].  Returns float32, same shape."""
    orig_shape = x.shape
    n = int(np.prod(orig_shape)) if len(orig_shape) else 1
    if n == 0:
        return jnp.zeros(orig_shape, jnp.float32)

    # Tiny inputs: let XLA fuse the elementwise math into the consumer instead
    # of paying launch + DMA + per-step overhead.
    if n * 4 < small_fallback_bytes:
        return x.astype(jnp.float32) * _INV_255 - np.float32(0.5)

    # Output rows must be a multiple of 8 (f32); input may need 16/32.
    sub = max(8, _sublane_granularity(x.dtype))

    # Lane-dense 2-D layout: pick the widest lane count that divides n exactly
    # so no pad / slice HBM round trips are needed.  Fall back to padding only
    # for awkward sizes.
    lanes = None
    for cand in (1024, 512, 256, 128):
        if n % cand == 0:
            lanes = cand
            break
    if lanes is None:
        lanes = 512 if n >= 512 else 128

    rows = -(-n // lanes)
    padded = rows * lanes

    xf = jnp.ravel(x)
    if padded != n:
        xf = jnp.pad(xf, (0, padded - n))
    x2 = xf.reshape(rows, lanes)

    total_elems = rows * lanes
    if total_elems <= block_elems:
        # Small/medium: single launch.  For mid-size inputs (>~2 MiB f32) split
        # into two balanced blocks so v7x can shard across its 2 TensorCores.
        if total_elems * 4 >= (1 << 21) and rows % (2 * sub) == 0:
            block_rows = rows // 2
            grid = (2,)
        else:
            block_rows = rows
            grid = (1,)
    else:
        # ~4 MiB f32 per output block; in+out double-buffered stays well under
        # the 32 MiB scoped-VMEM limit we set below.  Rows kept a multiple of
        # the sublane granularity so the BlockSpec lowers cleanly.
        block_rows = max(sub, (block_elems // lanes) // sub * sub)
        grid = (pl.cdiv(rows, block_rows),)

    out2 = pl.pallas_call(
        _pixel_preprocess_kernel,
        out_shape=jax.ShapeDtypeStruct((rows, lanes), jnp.float32),
        grid=grid,
        in_specs=[pl.BlockSpec((block_rows, lanes), lambda i: (i, 0))],
        out_specs=pl.BlockSpec((block_rows, lanes), lambda i: (i, 0)),
        compiler_params=pltpu.CompilerParams(
            dimension_semantics=("parallel",),
            vmem_limit_bytes=32 << 20,
        ),
    )(x2)

    if padded != n:
        return out2.reshape(padded)[:n].reshape(orig_shape)
    return out2.reshape(orig_shape)


# ----------------------------------------------------------------------------
if __name__ == "__main__":
    key = jax.random.PRNGKey(0)
    B, C, H, W = 2, 4, 16, 16

    # Pixel observations in [0, 255], NCHW like PyTorch (f32 and uint8 paths).
    x_f32 = jax.random.uniform(key, (B, C, H, W), jnp.float32, 0.0, 255.0)
    x_u8 = jax.random.randint(key, (B, C, H, W), 0, 256, jnp.int32).astype(jnp.uint8)

    # Force the Pallas path for the demo (inputs are below the default
    # small-input fallback threshold).
    fwd = jax.jit(functools.partial(pixel_preprocess, small_fallback_bytes=0))

    out_f32 = fwd(x_f32)
    out_u8 = fwd(x_u8)
    jax.block_until_ready((out_f32, out_u8))

    # Reference check against plain XLA math (torch semantics: x / 255 - 0.5).
    ref_f32 = x_f32.astype(jnp.float32) / 255.0 - 0.5
    ref_u8 = x_u8.astype(jnp.float32) / 255.0 - 0.5

    assert out_f32.shape == x_f32.shape and out_f32.dtype == jnp.float32
    assert out_u8.shape == x_u8.shape and out_u8.dtype == jnp.float32
    np.testing.assert_allclose(np.asarray(out_f32), np.asarray(ref_f32),
                               rtol=1e-6, atol=1e-6)
    np.testing.assert_allclose(np.asarray(out_u8), np.asarray(ref_u8),
                               rtol=1e-6, atol=1e-6)
    assert bool(jnp.all(jnp.isfinite(out_f32)))
    assert bool(jnp.all(jnp.isfinite(out_u8)))

    print("KERNEL_OK")
</pallas_src>

<mosaic_0001>
module attributes {stable_mosaic.version = 11 : i64} {
  func.func @_pixel_preprocess_kernel(%arg0: i32, %arg1: memref<2x1024xf32, #tpu.memory_space<vmem>>, %arg2: memref<2x1024xf32, #tpu.memory_space<vmem>>) attributes {dimension_semantics = [#tpu.dimension_semantics<parallel>], iteration_bounds = array<i64: 1>, scalar_prefetch = 0 : i64, scratch_operands = 0 : i64, tpu.core_type = #tpu.core_type<tc>, window_params = [{transform_indices = @transform_0, window_bounds = array<i64: 2, 1024>}, {transform_indices = @transform_1, window_bounds = array<i64: 2, 1024>}]} {
    %c0 = arith.constant 0 : index
    %c0_0 = arith.constant 0 : index
    %0 = vector.load %arg1[%c0, %c0_0] : memref<2x1024xf32, #tpu.memory_space<vmem>>, vector<2x1024xf32>
    %cst = arith.constant 0.00392156886 : f32
    %1 = vector.broadcast %cst : f32 to vector<2x1024xf32>
    %2 = arith.mulf %0, %1 : vector<2x1024xf32>
    %cst_1 = arith.constant 5.000000e-01 : f32
    %3 = vector.broadcast %cst_1 : f32 to vector<2x1024xf32>
    %4 = arith.subf %2, %3 : vector<2x1024xf32>
    %c0_2 = arith.constant 0 : index
    %c0_3 = arith.constant 0 : index
    %5 = vector.load %arg2[%c0_2, %c0_3] : memref<2x1024xf32, #tpu.memory_space<vmem>>, vector<2x1024xf32>
    tpu.vector_store %arg2[%c0_2, %c0_3], %4 {strides = array<i32>} : memref<2x1024xf32, #tpu.memory_space<vmem>>, vector<2x1024xf32>,
    return
  }
  func.func @transform_0(%arg0: i32) -> (i32, i32) {
    %c0_i32 = arith.constant 0 : i32
    %c0_i32_0 = arith.constant 0 : i32
    return %arg0, %c0_i32 : i32, i32
  }
  func.func @transform_1(%arg0: i32) -> (i32, i32) {
    %c0_i32 = arith.constant 0 : i32
    %c0_i32_0 = arith.constant 0 : i32
    return %arg0, %c0_i32 : i32, i32
  }
}

</mosaic_0001>

<bundles_post_ra>
// kernel: pixel_preprocess.1
= control target key start
LH: loop header
LB: loop body
LE: loop exit
PB: predicated region body
PF: predicated region fallthrough
CT: control target
= control target key end

     0   :  { %s44_s0 = inlined_call_operand.vmem [shape: f32[2,1024], index: 0, kind: input, shape index: {}]   ;;  %s45_s1 = inlined_call_operand.vmem [shape: f32[2,1024], index: 1, kind: output, shape index: {}]  }
   0x1   :  { %v8_v0 = vld [vmem:[%s44_s0] sm:$0xff]  ;;  %v9_v1 = vld [vmem:[%s44_s0 + $0x8] sm:$0xff] }
   0x2   :  { %v10_v2 = vmul.f32 0.003921569, %v8_v0  ;;  %v11_v3 = vmul.f32 0.003921569, %v9_v1 }
   0x4   :  { %v20_v4 = vadd.f32 -0.5, %v10_v2  ;;  %v21_v5 = vadd.f32 -0.5, %v11_v3 }
   0x6   :  { %14 = vst [vmem:[%s45_s1] sm:$0xff] %v20_v4  ;;  %15 = vst [vmem:[%s45_s1 + $0x8] sm:$0xff] %v21_v5 }

</bundles_post_ra>
